<compile_context>
chip_gen: v6e
topology: v6e:2x2x1
jax: 0.10.0
libtpu: 0.0.40
codegen_flags: <defaults>
</compile_context>

<pallas_src>
import functools

import jax
import jax.numpy as jnp
from jax import lax
from jax.experimental import pallas as pl
from jax.experimental.pallas import tpu as pltpu

_LANE = 128
_SUB = 8
_TARGET_BLOCK_BYTES = 4 * 1024 * 1024     # HBM traffic per input per grid step
_VMEM_LIMIT_BYTES = 32 * 1024 * 1024      # safe on v5e/v6e/v7x
_DEFAULT_MIN_KERNEL_ELEMENTS = 1 << 18    # below this a fused XLA reduce wins


def _precision_loss_kernel(x_ref, t_ref, out_ref, *, in_sigmoid: bool,
                           block_rows: int, tiles_per_core: int,
                           n_tiles: int, n_full_tiles: int, grid_tiles: int,
                           valid_rows: int):
    i = pl.program_id(1)   # "arbitrary" reduction axis

    @pl.when(i == 0)
    def _init():
        out_ref[...] = jnp.zeros_like(out_ref)

    x = x_ref[...].astype(jnp.float32)
    if in_sigmoid:
        # exp and the reciprocal both lower to the EUP slot (otherwise idle).
        x = pl.reciprocal(1.0 + jnp.exp(-x), approx=False)
    t = t_ref[...].astype(jnp.float32)
    prod = x * t

    def _accumulate(p, tt):
        # (block_rows,128)->(block_rows//8,8,128) regroups whole (8,128) vregs;
        # the axis-0 sum is plain VPU adds (no cross-lane/sublane reduce).
        # TODO(synk): if the bundle dump ever shows this reshape materializing
        # a VMEM copy, replace with a fori_loop over pl.ds(k*8, 8) slices.
        out_ref[0, 0] += jnp.sum(p.reshape(-1, _SUB, _LANE), axis=0)
        out_ref[0, 1] += jnp.sum(tt.reshape(-1, _SUB, _LANE), axis=0)

    if n_full_tiles == n_tiles and grid_tiles == n_tiles:
        # Every tile fully valid, no duplicate tiles: unconditional hot path.
        _accumulate(prod, t)
    else:
        c = pl.program_id(0)
        tile_id = c * tiles_per_core + i

        @pl.when(tile_id < n_full_tiles)
        def _full_tile():
            _accumulate(prod, t)

        if n_full_tiles != n_tiles:
            # Exactly one real partial tile; only it pays for the mask.
            @pl.when(tile_id == n_full_tiles)
            def _edge_tile():
                row = (tile_id * block_rows +
                       lax.broadcasted_iota(jnp.int32, (block_rows, _LANE), 0))
                mask = row < valid_rows
                # Mask prod itself: rows past the array end hold undefined
                # VMEM and could carry NaN/Inf.
                _accumulate(jnp.where(mask, prod, 0.0),
                            jnp.where(mask, t, 0.0))
        # tile_id beyond the last real tile: clamped duplicate (uneven core
        # split) — skip accumulation entirely.


def _xla_precision_loss(x, t, in_sigmoid):
    x = x.astype(jnp.float32)
    t = t.astype(jnp.float32)
    if in_sigmoid:
        x = jax.nn.sigmoid(x)
    tp = jnp.sum(x * t)
    s = jnp.sum(t)
    return (1.0 - tp / s).astype(jnp.float32)


def _num_tensorcores() -> int:
    """Best-effort TensorCore count (2 on v7x megacore, 1 on v5e/v6e)."""
    try:
        info = pltpu.get_tpu_info()
        for name in ("num_cores", "num_tensorcores", "tensorcore_count",
                     "cores_per_chip", "core_count"):
            v = getattr(info, name, None)
            if isinstance(v, int) and v > 0:
                return min(int(v), 2)
    except Exception:
        pass
    # Unknown: 2 is harmless (serial outer loop on 1-TC chips; duplicate-tile
    # cost is a single clamped block DMA that the kernel skips).
    return 2


def precision_loss(inputs: jax.Array, targets: jax.Array,
                   in_sigmoid: bool = False, *,
                   max_block_rows: int | None = None,
                   min_kernel_elements: int = _DEFAULT_MIN_KERNEL_ELEMENTS
                   ) -> jax.Array:
    """Pallas TPU implementation of PrecisionLoss.forward (scalar f32)."""
    x = jnp.ravel(inputs)
    t = jnp.ravel(targets)
    n = x.shape[0]

    # Sub-32-bit dtypes pack along sublanes -> keep kernel granularity a
    # multiple of the packed sublane tile.
    min_item = max(1, min(x.dtype.itemsize, t.dtype.itemsize))
    sub_mult = max(_SUB, 32 // min_item)
    group = sub_mult * _LANE

    n_main = (n // group) * group

    # Small-n fast path: a fused XLA reduction beats kernel dispatch overhead.
    if n < min_kernel_elements or n_main == 0:
        return _xla_precision_loss(x, t, in_sigmoid)

    # Ragged tail (< group elements) in plain JAX: avoids a full jnp.pad copy
    # of both tensors (which would double HBM traffic).
    tp_tail = jnp.float32(0.0)
    s_tail = jnp.float32(0.0)
    if n_main < n:
        xt = x[n_main:].astype(jnp.float32)
        tt = t[n_main:].astype(jnp.float32)
        if in_sigmoid:
            xt = jax.nn.sigmoid(xt)
        tp_tail = jnp.sum(xt * tt)
        s_tail = jnp.sum(tt)

    rows = n_main // _LANE                      # multiple of sub_mult
    x2 = x[:n_main].reshape(rows, _LANE)
    t2 = t[:n_main].reshape(rows, _LANE)

    # ~_TARGET_BLOCK_BYTES of HBM traffic per input per grid step.
    max_item = max(x.dtype.itemsize, t.dtype.itemsize)
    target_rows = max(sub_mult, _TARGET_BLOCK_BYTES // (_LANE * max_item))
    if max_block_rows is not None:
        target_rows = min(target_rows, max(sub_mult, int(max_block_rows)))
    target_rows -= target_rows % sub_mult
    block_rows = min(target_rows, rows)

    n_tiles = pl.cdiv(rows, block_rows)
    n_full_tiles = rows // block_rows
    nc = min(_num_tensorcores(), n_tiles)
    tiles_per_core = pl.cdiv(n_tiles, nc)
    grid_tiles = nc * tiles_per_core

    def in_index(c, i):
        # Clamp so duplicate trailing tiles (uneven core split) stay in
        # bounds; the kernel skips their accumulation.
        return (jnp.minimum(c * tiles_per_core + i, n_tiles - 1), 0)

    kernel = functools.partial(
        _precision_loss_kernel, in_sigmoid=in_sigmoid, block_rows=block_rows,
        tiles_per_core=tiles_per_core, n_tiles=n_tiles,
        n_full_tiles=n_full_tiles, grid_tiles=grid_tiles, valid_rows=rows)

    bytes_in = rows * _LANE * (x.dtype.itemsize + t.dtype.itemsize)
    cost = pl.CostEstimate(
        flops=3 * n_main,
        transcendentals=(n_main if in_sigmoid else 0),
        bytes_accessed=int(bytes_in) + nc * 2 * _SUB * _LANE * 4)

    parts = pl.pallas_call(
        kernel,
        out_shape=jax.ShapeDtypeStruct((nc, 2, _SUB, _LANE), jnp.float32),
        grid=(nc, tiles_per_core),
        in_specs=[
            pl.BlockSpec((block_rows, _LANE), in_index),
            pl.BlockSpec((block_rows, _LANE), in_index),
        ],
        out_specs=pl.BlockSpec((1, 2, _SUB, _LANE), lambda c, i: (c, 0, 0, 0)),
        compiler_params=pltpu.CompilerParams(
            dimension_semantics=("parallel", "arbitrary"),
            vmem_limit_bytes=_VMEM_LIMIT_BYTES),
        cost_estimate=cost,
    )(x2, t2)

    tp = jnp.sum(parts[:, 0]) + tp_tail
    s = jnp.sum(parts[:, 1]) + s_tail
    return (1.0 - tp / s).astype(jnp.float32)


def _reference(inputs, targets, in_sigmoid=False):
    x = jnp.ravel(inputs).astype(jnp.float32)
    t = jnp.ravel(targets).astype(jnp.float32)
    if in_sigmoid:
        x = jax.nn.sigmoid(x)
    TP = jnp.sum(x * t)
    FP = jnp.sum((1.0 - x) * t)
    return 1.0 - TP / (TP + FP)


if __name__ == "__main__":
    key = jax.random.PRNGKey(0)
    k1, k2, k3, k4, k5, k6 = jax.random.split(key, 6)

    # NCHW-like small shape: batch=2, channels=4, spatial=16x16.
    shape = (2, 4, 16, 16)
    logits = jax.random.normal(k1, shape, dtype=jnp.float32)
    probs = jax.nn.sigmoid(logits)
    targets = (jax.random.uniform(k2, shape) > 0.5).astype(jnp.float32)

    # 1) Kernel path, in_sigmoid=False (force the kernel at this small size).
    loss = precision_loss(probs, targets, in_sigmoid=False,
                          min_kernel_elements=0)
    jax.block_until_ready(loss)
    ref = _reference(probs, targets, in_sigmoid=False)
    assert jnp.allclose(loss, ref, atol=1e-5, rtol=1e-5), (loss, ref)

    # 2) Kernel path, in_sigmoid=True (sigmoid computed inside the kernel).
    loss_s = precision_loss(logits, targets, in_sigmoid=True,
                            min_kernel_elements=0)
    jax.block_until_ready(loss_s)
    ref_s = _reference(logits, targets, in_sigmoid=True)
    assert jnp.allclose(loss_s, ref_s, atol=1e-5, rtol=1e-5), (loss_s, ref_s)

    # 3) Default path for tiny inputs: pure-XLA fallback.
    loss_fb = precision_loss(probs, targets, in_sigmoid=False)
    jax.block_until_ready(loss_fb)
    assert jnp.allclose(loss_fb, ref, atol=1e-5, rtol=1e-5), (loss_fb, ref)

    # 4) Non-aligned element count: exercises the plain-JAX tail path.
    shape2 = (2, 3, 37, 29)
    logits2 = jax.random.normal(k3, shape2, dtype=jnp.float32)
    targets2 = (jax.random.uniform(k4, shape2) > 0.5).astype(jnp.float32)
    loss2 = precision_loss(logits2, targets2, in_sigmoid=True,
                           min_kernel_elements=0)
    jax.block_until_ready(loss2)
    ref2 = _reference(logits2, targets2, in_sigmoid=True)
    assert jnp.allclose(loss2, ref2, atol=1e-5, rtol=1e-5), (loss2, ref2)

    # 5) Multi-tile grid + masked partial edge tile + 2-way core split
    #    (small max_block_rows to exercise the path at modest size).
    shape3 = (1, 5, 256, 257)
    logits3 = jax.random.normal(k5, shape3, dtype=jnp.float32)
    targets3 = (jax.random.uniform(k6, shape3) > 0.5).astype(jnp.float32)
    loss3 = precision_loss(logits3, targets3, in_sigmoid=True,
                           max_block_rows=512)
    jax.block_until_ready(loss3)
    ref3 = _reference(logits3, targets3, in_sigmoid=True)
    assert jnp.allclose(loss3, ref3, atol=1e-4, rtol=1e-5), (loss3, ref3)

    # 6) Uneven core split (odd tile count): exercises the clamped duplicate
    #    tile that the kernel must skip.
    loss4 = precision_loss(logits3, targets3, in_sigmoid=True,
                           max_block_rows=1024)
    jax.block_until_ready(loss4)
    assert jnp.allclose(loss4, ref3, atol=1e-4, rtol=1e-5), (loss4, ref3)

    print("KERNEL_OK")
</pallas_src>

<mosaic_0001>
module attributes {stable_mosaic.version = 11 : i64} {
  func.func @_precision_loss_kernel(%arg0: i32, %arg1: i32, %arg2: memref<16x128xf32, #tpu.memory_space<vmem>>, %arg3: memref<16x128xf32, #tpu.memory_space<vmem>>, %arg4: memref<1x2x8x128xf32, #tpu.memory_space<vmem>>) attributes {dimension_semantics = [#tpu.dimension_semantics<parallel>, #tpu.dimension_semantics<arbitrary>], iteration_bounds = array<i64: 1, 1>, scalar_prefetch = 0 : i64, scratch_operands = 0 : i64, tpu.core_type = #tpu.core_type<tc>, window_params = [{transform_indices = @transform_0, window_bounds = array<i64: 16, 128>}, {transform_indices = @transform_1, window_bounds = array<i64: 16, 128>}, {transform_indices = @transform_2, window_bounds = array<i64: 1, 2, 8, 128>}]} {
    %c0_i32 = arith.constant 0 : i32
    %0 = arith.cmpi eq, %arg1, %c0_i32 : i32
    %1 = arith.extui %0 : i1 to i32
    %c0_i32_0 = arith.constant 0 : i32
    %2 = arith.cmpi ne, %1, %c0_i32_0 : i32
    scf.if %2 {
      %cst_20 = arith.constant 0.000000e+00 : f32
      %22 = vector.broadcast %cst_20 : f32 to vector<1x2x8x128xf32>
      %c0_21 = arith.constant 0 : index
      %c0_22 = arith.constant 0 : index
      %c0_23 = arith.constant 0 : index
      %c0_24 = arith.constant 0 : index
      %23 = vector.load %arg4[%c0_21, %c0_22, %c0_23, %c0_24] : memref<1x2x8x128xf32, #tpu.memory_space<vmem>>, vector<1x2x8x128xf32>
      tpu.vector_store %arg4[%c0_21, %c0_22, %c0_23, %c0_24], %22 {strides = array<i32>} : memref<1x2x8x128xf32, #tpu.memory_space<vmem>>, vector<1x2x8x128xf32>,
    } else {
    }
    %c0 = arith.constant 0 : index
    %c0_1 = arith.constant 0 : index
    %3 = vector.load %arg2[%c0, %c0_1] : memref<16x128xf32, #tpu.memory_space<vmem>>, vector<16x128xf32>
    %c0_2 = arith.constant 0 : index
    %c0_3 = arith.constant 0 : index
    %4 = vector.load %arg3[%c0_2, %c0_3] : memref<16x128xf32, #tpu.memory_space<vmem>>, vector<16x128xf32>
    %5 = arith.mulf %3, %4 : vector<16x128xf32>
    %c0_4 = arith.constant 0 : index
    %c0_5 = arith.constant 0 : index
    %c0_6 = arith.constant 0 : index
    %c0_7 = arith.constant 0 : index
    %6 = vector.load %arg4[%c0_4, %c0_5, %c0_6, %c0_7] : memref<1x2x8x128xf32, #tpu.memory_space<vmem>>, vector<1x1x8x128xf32>
    %7 = vector.shape_cast %6 : vector<1x1x8x128xf32> to vector<8x128xf32>
    %8 = vector.shape_cast %5 : vector<16x128xf32> to vector<2x8x128xf32>
    %cst = arith.constant dense<0.000000e+00> : vector<8x128xf32>
    %9 = vector.multi_reduction <add>, %8, %cst [0] : vector<2x8x128xf32> to vector<8x128xf32>
    %10 = arith.addf %7, %9 : vector<8x128xf32>
    %c0_8 = arith.constant 0 : index
    %c0_9 = arith.constant 0 : index
    %c0_10 = arith.constant 0 : index
    %c0_11 = arith.constant 0 : index
    %11 = vector.load %arg4[%c0_8, %c0_9, %c0_10, %c0_11] : memref<1x2x8x128xf32, #tpu.memory_space<vmem>>, vector<1x1x8x128xf32>
    %12 = vector.shape_cast %11 : vector<1x1x8x128xf32> to vector<8x128xf32>
    %13 = vector.shape_cast %10 : vector<8x128xf32> to vector<1x1x8x128xf32>
    tpu.vector_store %arg4[%c0_8, %c0_9, %c0_10, %c0_11], %13 {strides = array<i32>} : memref<1x2x8x128xf32, #tpu.memory_space<vmem>>, vector<1x1x8x128xf32>,
    %c0_12 = arith.constant 0 : index
    %c1 = arith.constant 1 : index
    %c0_13 = arith.constant 0 : index
    %c0_14 = arith.constant 0 : index
    %14 = vector.load %arg4[%c0_12, %c1, %c0_13, %c0_14] : memref<1x2x8x128xf32, #tpu.memory_space<vmem>>, vector<1x1x8x128xf32>
    %15 = vector.shape_cast %14 : vector<1x1x8x128xf32> to vector<8x128xf32>
    %16 = vector.shape_cast %4 : vector<16x128xf32> to vector<2x8x128xf32>
    %cst_15 = arith.constant dense<0.000000e+00> : vector<8x128xf32>
    %17 = vector.multi_reduction <add>, %16, %cst_15 [0] : vector<2x8x128xf32> to vector<8x128xf32>
    %18 = arith.addf %15, %17 : vector<8x128xf32>
    %c0_16 = arith.constant 0 : index
    %c1_17 = arith.constant 1 : index
    %c0_18 = arith.constant 0 : index
    %c0_19 = arith.constant 0 : index
    %19 = vector.load %arg4[%c0_16, %c1_17, %c0_18, %c0_19] : memref<1x2x8x128xf32, #tpu.memory_space<vmem>>, vector<1x1x8x128xf32>
    %20 = vector.shape_cast %19 : vector<1x1x8x128xf32> to vector<8x128xf32>
    %21 = vector.shape_cast %18 : vector<8x128xf32> to vector<1x1x8x128xf32>
    tpu.vector_store %arg4[%c0_16, %c1_17, %c0_18, %c0_19], %21 {strides = array<i32>} : memref<1x2x8x128xf32, #tpu.memory_space<vmem>>, vector<1x1x8x128xf32>,
    return
  }
  func.func @transform_0(%arg0: i32, %arg1: i32) -> (i32, i32) {
    %c1_i32 = arith.constant 1 : i32
    %0 = arith.muli %arg0, %c1_i32 : i32
    %1 = arith.addi %0, %arg1 : i32
    %c0_i32 = arith.constant 0 : i32
    %2 = arith.minsi %1, %c0_i32 : i32
    %c0_i32_0 = arith.constant 0 : i32
    %c0_i32_1 = arith.constant 0 : i32
    return %2, %c0_i32_0 : i32, i32
  }
  func.func @transform_1(%arg0: i32, %arg1: i32) -> (i32, i32) {
    %c1_i32 = arith.constant 1 : i32
    %0 = arith.muli %arg0, %c1_i32 : i32
    %1 = arith.addi %0, %arg1 : i32
    %c0_i32 = arith.constant 0 : i32
    %2 = arith.minsi %1, %c0_i32 : i32
    %c0_i32_0 = arith.constant 0 : i32
    %c0_i32_1 = arith.constant 0 : i32
    return %2, %c0_i32_0 : i32, i32
  }
  func.func @transform_2(%arg0: i32, %arg1: i32) -> (i32, i32, i32, i32) {
    %c0_i32 = arith.constant 0 : i32
    %c0_i32_0 = arith.constant 0 : i32
    %c0_i32_1 = arith.constant 0 : i32
    %c0_i32_2 = arith.constant 0 : i32
    return %arg0, %c0_i32, %c0_i32_0, %c0_i32_1 : i32, i32, i32, i32
  }
}

</mosaic_0001>

<bundles_post_ra>
// kernel: tpu_custom_call.1
= control target key start
LH: loop header
LB: loop body
LE: loop exit
PB: predicated region body
PF: predicated region fallthrough
CT: control target
= control target key end

     0   :  { %7 = vsyncpa [#allocation3], 0  ;;  %s213_s0 = inlined_call_operand.hbm [shape: f32[16,128], index: 0, kind: input, shape index: {}]   ;;  %s214_s1 = inlined_call_operand.hbm [shape: f32[16,128], index: 1, kind: input, shape index: {}]   ;;  %s215_s2 = inlined_call_operand.hbm [shape: f32[1,2,8,128], index: 2, kind: output, shape index: {}]  }
   0x1   :  { %8 = vsyncpa [#allocation6], 0 }
   0x2   :  { %9 = vsyncpa [#allocation4], 0  ;;  %s175_s9 = smov [#allocation2]  }
   0x3   :  { %s21_s10 = sshll.u32 %s175_s9, 4  ;;  %s22_s10 = int_to_ptr.vmem [resolvable:$true] %s21_s10 }
   0x4   :  { %s117_s11 = scalar_lea.vmem %s22_s10, 256  ;;  %p122_p1 = scmp.lt.s32.totalorder %s22_s10, %s22_s10 }
   0x5   :  { %p118_p0 = scmp.ne.s32.totalorder %s22_s10, %s117_s11  ;;  %p123_p2 = scmp.lt.s32.totalorder %s117_s11, %s117_s11 }
   0x7   :  { %p124_p3 = por %p123_p2, %p122_p1 }
   0x9   :  { %p125_p4 = pnand %p124_p3, %p118_p0 }
   0xb   :  { %128 = shalt.err (!%p125_p4)
}
   0xc   :  { %s176_s12 = smov 128   ;;  %s177_s13 = smov 8  }
   0xd   :  { %27 = dma.hbm_to_vmem [thread:$0]  %s213_s0, 256, %s22_s10, [#allocation3], %s176_s12, %s176_s12, %s177_s13  }
   0xe   :  { %s178_s16 = smov [#allocation5]  }
   0xf   :  { %s39_s17 = sshll.u32 %s178_s16, 4  ;;  %s40_s17 = int_to_ptr.vmem [resolvable:$true] %s39_s17 }
  0x10   :  { %s137_s18 = scalar_lea.vmem %s40_s17, 256  ;;  %p142_p6 = scmp.lt.s32.totalorder %s40_s17, %s40_s17 }
  0x11   :  { %p138_p5 = scmp.ne.s32.totalorder %s40_s17, %s137_s18  ;;  %p143_p7 = scmp.lt.s32.totalorder %s137_s18, %s137_s18 }
  0x13   :  { %p144_p8 = por %p143_p7, %p142_p6 }
  0x15   :  { %p145_p9 = pnand %p144_p8, %p138_p5 }
  0x17   :  { %148 = shalt.err (!%p145_p9)
}
  0x18   :  { %45 = dma.hbm_to_vmem [thread:$0]  %s214_s1, 256, %s40_s17, [#allocation6], %s176_s12, %s176_s12, %s177_s13  }
  0x19   :  { %169 = dma.done.wait [#allocation3], 256  }
  0x1a   :  { %170 = vsyncadd [#allocation3], 4294967040 }
  0x1b   :  { %171 = dma.done.wait [#allocation6], 256  }
  0x1c   :  { %172 = vsyncadd [#allocation6], 4294967040  ;;  %v66_v0 = vld [vmem:[#allocation2] sm:$0xff]  ;;  %v67_v1 = vld [vmem:[#allocation2 + $0x8] sm:$0xff]  ;;  %s179_s0 = smov [#allocation7]  }
  0x1d   :  { %v68_v2 = vld [vmem:[#allocation5] sm:$0xff]  ;;  %v69_v3 = vld [vmem:[#allocation5 + $0x8] sm:$0xff]  ;;  %s86_s21 = sshll.u32 %s179_s0, 4  ;;  %s87_s21 = int_to_ptr.vmem [resolvable:$true] %s86_s21 }
  0x1e   :  { %v70_v4 = vmul.f32 %v68_v2, %v66_v0  ;;  %v71_v5 = vmul.f32 %v69_v3, %v67_v1  ;;  %v78_v6 = vadd.f32 %v69_v3, %v68_v2  ;;  %s149_s22 = scalar_lea.vmem %s87_s21, 256  ;;  %p154_p11 = scmp.lt.s32.totalorder %s87_s21, %s87_s21 }
  0x1f   :  { %p150_p10 = scmp.ne.s32.totalorder %s87_s21, %s149_s22  ;;  %p155_p12 = scmp.lt.s32.totalorder %s149_s22, %s149_s22 }
  0x20   :  { %v73_v7 = vadd.f32 %v71_v5, %v70_v4  ;;  %80 = vst [vmem:[#allocation7 + $0x8] sm:$0xff] %v78_v6 }
  0x21   :  { %p156_p13 = por %p155_p12, %p154_p11 }
  0x22   :  { %75 = vst [vmem:[#allocation7] sm:$0xff] %v73_v7 }
  0x23   :  { %p157_p0 = pnand %p156_p13, %p150_p10 }
  0x25   :  { %160 = shalt.err (!%p157_p0)
}
  0x26   :  { %92 = dma.vmem_to_hbm [thread:$0]  %s87_s21, 256, %s215_s2, [#allocation4], %s176_s12, %s176_s12, %s177_s13  }
  0x27   :  { %173 = dma.done.wait [#allocation4], 256  }
  0x28   :  { %174 = vsyncadd [#allocation4], 4294967040 }
  0x29   :  { %96 = vsyncpa [#allocation3], 1 }
  0x2a   :  { %97 = vsyncpa [#allocation6], 1 }
  0x2b   :  { %98 = vsyncpa [#allocation4], 1 }

</bundles_post_ra>
